<compile_context>
chip_gen: v7x
topology: tpu7x:2x2x1
jax: 0.10.0
libtpu: 0.0.40
codegen_flags: <defaults>
</compile_context>

<pallas_src>
import functools

import jax
import jax.numpy as jnp
from jax.experimental import pallas as pl
from jax.experimental.pallas import tpu as pltpu


def _round_up(x, m):
    return (x + m - 1) // m * m


def _pick_tk(dp):
    """Largest K tile in {512, 256, 128} dividing the (128-aligned) Dp."""
    for cand in (512, 256, 128):
        if dp % cand == 0:
            return min(cand, dp)
    return dp


# ---------------------------------------------------------------------------
# Fused kernel.
#   grid = (Bp//bm, Dp//tk); the K axis is the (innermost) reduction axis.
#   acc  = sum_k  x[:, k] @ w1[k, :]           (f32 scratch, persists over k)
#   on last k:  h = relu(acc + b1);  o = h @ w2_all + b2_all
# ---------------------------------------------------------------------------
def _fused_multihead_kernel(x_ref, w1_ref, b1_ref, w2_ref, b2_ref, o_ref,
                            acc_ref):
    k = pl.program_id(1)

    @pl.when(k == 0)
    def _():
        acc_ref[...] = jnp.zeros_like(acc_ref)

    acc_ref[...] += jnp.dot(x_ref[...], w1_ref[...],
                            preferred_element_type=jnp.float32)

    @pl.when(k == pl.num_programs(1) - 1)
    def _():
        h = jnp.maximum(acc_ref[...] + b1_ref[...], 0.0)        # ReLU backbone
        logits = jnp.dot(h.astype(jnp.bfloat16), w2_ref[...],
                         preferred_element_type=jnp.float32)    # all heads at once
        o_ref[...] = (logits + b2_ref[...]).astype(o_ref.dtype)


# ---------------------------------------------------------------------------
# One-time weight preparation (hoisted out of the per-call forward).
# ---------------------------------------------------------------------------
def prepare_params(params):
    """Repack + cast + pad weights once.  Returns (prepared_arrays, meta)."""
    w1 = jnp.asarray(params["w1"])            # [D, F]
    b1 = jnp.asarray(params["b1"])            # [F]
    head_w = jnp.asarray(params["head_w"])    # [H, F, C]
    head_b = jnp.asarray(params["head_b"])    # [H, C]

    D, F = w1.shape
    Hh, _, C = head_w.shape
    HC = Hh * C

    Dp = _round_up(D, 128)
    Fp = _round_up(F, 128)
    HCp = _round_up(HC, 128)

    # All heads packed into one weight slab: W_all[f, h*C + c] = head_w[h, f, c].
    w2_all = head_w.transpose(1, 0, 2).reshape(F, HC)
    b2_all = head_b.reshape(HC)

    # Zero-pad (zeros in padded K/N columns keep the math exact).
    w1_p = jnp.zeros((Dp, Fp), jnp.bfloat16).at[:D, :F].set(
        w1.astype(jnp.bfloat16))
    b1_p = jnp.zeros((1, Fp), jnp.float32).at[0, :F].set(
        b1.astype(jnp.float32))
    w2_p = jnp.zeros((Fp, HCp), jnp.bfloat16).at[:F, :HC].set(
        w2_all.astype(jnp.bfloat16))
    b2_p = jnp.zeros((1, HCp), jnp.float32).at[0, :HC].set(
        b2_all.astype(jnp.float32))

    prepared = {"w1_p": w1_p, "b1_p": b1_p, "w2_p": w2_p, "b2_p": b2_p}
    prepared = jax.tree_util.tree_map(jax.block_until_ready,
                                      jax.device_put(prepared))
    meta = {"num_heads": int(Hh), "num_classes": int(C), "in_dim": int(D)}
    return prepared, meta


# ---------------------------------------------------------------------------
# Multihead_Model.forward  (stacked output [H, B, C])
# ---------------------------------------------------------------------------
@functools.partial(jax.jit, static_argnames=("num_heads", "num_classes"))
def multihead_model_forward(x, prepared, *, num_heads, num_classes):
    """x: [B, C, H, W] NCHW. Returns stacked per-head logits [num_heads, B, C]."""
    w1_p, b1_p = prepared["w1_p"], prepared["b1_p"]
    w2_p, b2_p = prepared["w2_p"], prepared["b2_p"]
    Dp, Fp = w1_p.shape
    HCp = w2_p.shape[1]
    HC = num_heads * num_classes

    B = x.shape[0]
    x_flat = x.reshape(B, -1)                 # torch .view(B, -1)
    D = x_flat.shape[1]

    # Batch tiling: tiny batches -> single sublane-aligned tile; large batches
    # -> 128-row tiles sharded across TensorCores (v7x) via "parallel".
    if B > 128:
        Bp = _round_up(B, 128)
        bm = 128
    else:
        Bp = _round_up(B, 8)
        bm = Bp

    # Activation cast; pad only if not already tile-aligned.
    x_b = x_flat.astype(jnp.bfloat16)
    if (Bp, Dp) != (B, D):
        x_b = jnp.zeros((Bp, Dp), jnp.bfloat16).at[:B, :D].set(x_b)

    tk = _pick_tk(Dp)
    grid = (Bp // bm, Dp // tk)

    # Explicit VMEM budget (double-buffered tiles + resident head slab + scratch),
    # capped at v7x's 64 MiB physical VMEM.
    vmem_need = (2 * (bm * tk * 2 + tk * Fp * 2 + Fp * 4 + Fp * HCp * 2
                      + HCp * 4 + bm * HCp * 4)
                 + bm * Fp * 4)
    vmem_limit = int(min(max(2 * vmem_need, 8 << 20), 64 << 20))

    cost = pl.CostEstimate(
        flops=int(2 * Bp * Dp * Fp + 2 * Bp * Fp * HCp),
        transcendentals=0,
        bytes_accessed=int(Bp * Dp * 2 + Dp * Fp * 2 + Fp * HCp * 2
                           + Fp * 4 + HCp * 4 + Bp * HCp * 4),
    )

    out = pl.pallas_call(
        _fused_multihead_kernel,
        out_shape=jax.ShapeDtypeStruct((Bp, HCp), jnp.float32),
        grid=grid,
        in_specs=[
            pl.BlockSpec((bm, tk), lambda b, k: (b, k)),     # x tile
            pl.BlockSpec((tk, Fp), lambda b, k: (k, 0)),     # w1 tile (streamed)
            pl.BlockSpec((1, Fp), lambda b, k: (0, 0)),      # b1
            pl.BlockSpec((Fp, HCp), lambda b, k: (0, 0)),    # packed head weights
            pl.BlockSpec((1, HCp), lambda b, k: (0, 0)),     # packed head biases
        ],
        out_specs=pl.BlockSpec((bm, HCp), lambda b, k: (b, 0)),
        scratch_shapes=[pltpu.VMEM((bm, Fp), jnp.float32)],
        compiler_params=pltpu.CompilerParams(
            dimension_semantics=("parallel", "arbitrary"),
            vmem_limit_bytes=vmem_limit),
        cost_estimate=cost,
    )(x_b, w1_p, b1_p, w2_p, b2_p)

    logits = out[:B, :HC]                                    # [B, H*C]
    return logits.reshape(B, num_heads, num_classes).transpose(1, 0, 2)


def multihead_model_forward_list(x, prepared, meta):
    """PyTorch-style API: returns a Python list of per-head logits [B, C]."""
    stacked = multihead_model_forward(
        x, prepared, num_heads=meta["num_heads"],
        num_classes=meta["num_classes"])
    return [stacked[h] for h in range(stacked.shape[0])]


# ---------------------------------------------------------------------------
# Parameter init (mirrors a simple Linear backbone + per-task Linear heads)
# ---------------------------------------------------------------------------
def init_params(key, in_dim, num_ftrs, num_heads, num_classes):
    k1, k2, k3, k4 = jax.random.split(key, 4)
    scale1 = 1.0 / jnp.sqrt(in_dim)
    scale2 = 1.0 / jnp.sqrt(num_ftrs)
    return {
        "w1": jax.random.normal(k1, (in_dim, num_ftrs), jnp.float32) * scale1,
        "b1": jax.random.normal(k2, (num_ftrs,), jnp.float32) * scale1,
        "head_w": jax.random.normal(k3, (num_heads, num_ftrs, num_classes),
                                    jnp.float32) * scale2,
        "head_b": jax.random.normal(k4, (num_heads, num_classes),
                                    jnp.float32) * scale2,
    }


if __name__ == "__main__":
    B, C, Hs, Ws = 2, 4, 16, 16          # NCHW input
    NUM_FTRS = 32                        # self.num_ftrs
    NUM_HEADS = 3                        # number of task heads in classifier
    NUM_CLASSES = 10                     # classes per task head

    key = jax.random.PRNGKey(0)
    kx, kp = jax.random.split(key)
    x = jax.random.normal(kx, (B, C, Hs, Ws), jnp.float32)
    params = init_params(kp, C * Hs * Ws, NUM_FTRS, NUM_HEADS, NUM_CLASSES)

    # One-time weight preparation (hoisted out of the per-call forward).
    prepared, meta = prepare_params(params)

    stacked = multihead_model_forward(
        x, prepared, num_heads=meta["num_heads"],
        num_classes=meta["num_classes"])
    stacked = jax.block_until_ready(stacked)
    assert stacked.shape == (NUM_HEADS, B, NUM_CLASSES)

    # Reference in plain JAX, with the same bf16 casts the kernel uses.
    x_flat = x.reshape(B, -1)
    xb = x_flat.astype(jnp.bfloat16).astype(jnp.float32)
    w1b = params["w1"].astype(jnp.bfloat16).astype(jnp.float32)
    hidden_ref = jnp.maximum(xb @ w1b + params["b1"], 0.0)
    hb = hidden_ref.astype(jnp.bfloat16).astype(jnp.float32)
    for h in range(NUM_HEADS):
        whb = params["head_w"][h].astype(jnp.bfloat16).astype(jnp.float32)
        ref = hb @ whb + params["head_b"][h]
        assert stacked[h].shape == (B, NUM_CLASSES)
        assert jnp.allclose(stacked[h], ref, atol=1e-2, rtol=1e-2), (
            f"head {h} mismatch: max abs err "
            f"{jnp.max(jnp.abs(stacked[h] - ref))}")

    # PyTorch-style list API (lazy slices outside jit).
    outputs = multihead_model_forward_list(x, prepared, meta)
    assert len(outputs) == NUM_HEADS and outputs[0].shape == (B, NUM_CLASSES)

    print("KERNEL_OK")
</pallas_src>

<mosaic_0001>
module attributes {stable_mosaic.version = 11 : i64} {
  func.func @_fused_multihead_kernel(%arg0: i32, %arg1: i32, %arg2: memref<8x512xbf16, #tpu.memory_space<vmem>>, %arg3: memref<512x128xbf16, #tpu.memory_space<vmem>>, %arg4: memref<1x128xf32, #tpu.memory_space<vmem>>, %arg5: memref<128x128xbf16, #tpu.memory_space<vmem>>, %arg6: memref<1x128xf32, #tpu.memory_space<vmem>>, %arg7: memref<8x128xf32, #tpu.memory_space<vmem>>, %arg8: memref<8x128xf32, #tpu.memory_space<vmem>>) attributes {dimension_semantics = [#tpu.dimension_semantics<parallel>, #tpu.dimension_semantics<arbitrary>], iteration_bounds = array<i64: 1, 2>, scalar_prefetch = 0 : i64, scratch_operands = 1 : i64, tpu.core_type = #tpu.core_type<tc>, window_params = [{transform_indices = @transform_0, window_bounds = array<i64: 8, 512>}, {transform_indices = @transform_1, window_bounds = array<i64: 512, 128>}, {pipeline_mode = #tpu.pipeline_mode<synchronous>, transform_indices = @transform_2, window_bounds = array<i64: 1, 128>}, {pipeline_mode = #tpu.pipeline_mode<synchronous>, transform_indices = @transform_3, window_bounds = array<i64: 128, 128>}, {pipeline_mode = #tpu.pipeline_mode<synchronous>, transform_indices = @transform_4, window_bounds = array<i64: 1, 128>}, {transform_indices = @transform_5, window_bounds = array<i64: 8, 128>}]} {
    %c0_i32 = arith.constant 0 : i32
    %0 = arith.cmpi eq, %arg1, %c0_i32 : i32
    %1 = arith.extui %0 : i1 to i32
    %c0_i32_0 = arith.constant 0 : i32
    %2 = arith.cmpi ne, %1, %c0_i32_0 : i32
    scf.if %2 {
      %cst_9 = arith.constant 0.000000e+00 : f32
      %12 = vector.broadcast %cst_9 : f32 to vector<8x128xf32>
      %c0_10 = arith.constant 0 : index
      %c0_11 = arith.constant 0 : index
      %13 = vector.load %arg8[%c0_10, %c0_11] : memref<8x128xf32, #tpu.memory_space<vmem>>, vector<8x128xf32>
      tpu.vector_store %arg8[%c0_10, %c0_11], %12 {strides = array<i32>} : memref<8x128xf32, #tpu.memory_space<vmem>>, vector<8x128xf32>,
    } else {
    }
    %c0 = arith.constant 0 : index
    %c0_1 = arith.constant 0 : index
    %3 = vector.load %arg8[%c0, %c0_1] : memref<8x128xf32, #tpu.memory_space<vmem>>, vector<8x128xf32>
    %c0_2 = arith.constant 0 : index
    %c0_3 = arith.constant 0 : index
    %4 = vector.load %arg2[%c0_2, %c0_3] : memref<8x512xbf16, #tpu.memory_space<vmem>>, vector<8x512xbf16>
    %c0_4 = arith.constant 0 : index
    %c0_5 = arith.constant 0 : index
    %5 = vector.load %arg3[%c0_4, %c0_5] : memref<512x128xbf16, #tpu.memory_space<vmem>>, vector<512x128xbf16>
    %cst = arith.constant dense<0.000000e+00> : vector<8x128xf32>
    %6 = tpu.matmul %4, %5, %cst {dimension_numbers = #tpu.dot_dimension_numbers<[1], [0], [0], [1], [0, 0, 1, 1], [], []>} : vector<8x512xbf16>, vector<512x128xbf16>, vector<8x128xf32> -> vector<8x128xf32>
    %7 = arith.addf %3, %6 : vector<8x128xf32>
    %c0_6 = arith.constant 0 : index
    %c0_7 = arith.constant 0 : index
    %8 = vector.load %arg8[%c0_6, %c0_7] : memref<8x128xf32, #tpu.memory_space<vmem>>, vector<8x128xf32>
    tpu.vector_store %arg8[%c0_6, %c0_7], %7 {strides = array<i32>} : memref<8x128xf32, #tpu.memory_space<vmem>>, vector<8x128xf32>,
    %c1_i32 = arith.constant 1 : i32
    %9 = arith.cmpi eq, %arg1, %c1_i32 : i32
    %10 = arith.extui %9 : i1 to i32
    %c0_i32_8 = arith.constant 0 : i32
    %11 = arith.cmpi ne, %10, %c0_i32_8 : i32
    scf.if %11 {
      %c0_9 = arith.constant 0 : index
      %c0_10 = arith.constant 0 : index
      %12 = vector.load %arg8[%c0_9, %c0_10] : memref<8x128xf32, #tpu.memory_space<vmem>>, vector<8x128xf32>
      %c0_11 = arith.constant 0 : index
      %c0_12 = arith.constant 0 : index
      %13 = vector.load %arg4[%c0_11, %c0_12] : memref<1x128xf32, #tpu.memory_space<vmem>>, vector<1x128xf32>
      %14 = vector.broadcast %13 : vector<1x128xf32> to vector<8x128xf32>
      %15 = arith.addf %12, %14 : vector<8x128xf32>
      %cst_13 = arith.constant 0.000000e+00 : f32
      %16 = vector.broadcast %cst_13 : f32 to vector<8x128xf32>
      %17 = arith.maximumf %15, %16 : vector<8x128xf32>
      %18 = arith.truncf %17 : vector<8x128xf32> to vector<8x128xbf16>
      %c0_14 = arith.constant 0 : index
      %c0_15 = arith.constant 0 : index
      %19 = vector.load %arg5[%c0_14, %c0_15] : memref<128x128xbf16, #tpu.memory_space<vmem>>, vector<128x128xbf16>
      %cst_16 = arith.constant dense<0.000000e+00> : vector<8x128xf32>
      %20 = tpu.matmul %18, %19, %cst_16 {dimension_numbers = #tpu.dot_dimension_numbers<[1], [0], [0], [1], [0, 0, 1, 1], [], []>} : vector<8x128xbf16>, vector<128x128xbf16>, vector<8x128xf32> -> vector<8x128xf32>
      %c0_17 = arith.constant 0 : index
      %c0_18 = arith.constant 0 : index
      %21 = vector.load %arg6[%c0_17, %c0_18] : memref<1x128xf32, #tpu.memory_space<vmem>>, vector<1x128xf32>
      %22 = vector.broadcast %21 : vector<1x128xf32> to vector<8x128xf32>
      %23 = arith.addf %20, %22 : vector<8x128xf32>
      %c0_19 = arith.constant 0 : index
      %c0_20 = arith.constant 0 : index
      %24 = vector.load %arg7[%c0_19, %c0_20] : memref<8x128xf32, #tpu.memory_space<vmem>>, vector<8x128xf32>
      tpu.vector_store %arg7[%c0_19, %c0_20], %23 {strides = array<i32>} : memref<8x128xf32, #tpu.memory_space<vmem>>, vector<8x128xf32>,
    } else {
    }
    return
  }
  func.func @transform_0(%arg0: i32, %arg1: i32) -> (i32, i32) {
    %c0_i32 = arith.constant 0 : i32
    return %arg0, %arg1 : i32, i32
  }
  func.func @transform_1(%arg0: i32, %arg1: i32) -> (i32, i32) {
    %c0_i32 = arith.constant 0 : i32
    %c0_i32_0 = arith.constant 0 : i32
    return %arg1, %c0_i32 : i32, i32
  }
  func.func @transform_2(%arg0: i32, %arg1: i32) -> (i32, i32) {
    %c0_i32 = arith.constant 0 : i32
    %c0_i32_0 = arith.constant 0 : i32
    %c0_i32_1 = arith.constant 0 : i32
    return %c0_i32, %c0_i32_0 : i32, i32
  }
  func.func @transform_3(%arg0: i32, %arg1: i32) -> (i32, i32) {
    %c0_i32 = arith.constant 0 : i32
    %c0_i32_0 = arith.constant 0 : i32
    %c0_i32_1 = arith.constant 0 : i32
    return %c0_i32, %c0_i32_0 : i32, i32
  }
  func.func @transform_4(%arg0: i32, %arg1: i32) -> (i32, i32) {
    %c0_i32 = arith.constant 0 : i32
    %c0_i32_0 = arith.constant 0 : i32
    %c0_i32_1 = arith.constant 0 : i32
    return %c0_i32, %c0_i32_0 : i32, i32
  }
  func.func @transform_5(%arg0: i32, %arg1: i32) -> (i32, i32) {
    %c0_i32 = arith.constant 0 : i32
    %c0_i32_0 = arith.constant 0 : i32
    return %arg0, %c0_i32 : i32, i32
  }
}

</mosaic_0001>

<bundles_post_ra>
// kernel: multihead_model_forward.1
= control target key start
LH: loop header
LB: loop body
LE: loop exit
PB: predicated region body
PF: predicated region fallthrough
CT: control target
= control target key end

     0   :  { %10 = vsyncpa [#allocation4], 0  ;;  %s1421_s0 = inlined_call_operand.vmem [shape: bf16[8,1024], index: 0, kind: input, shape index: {}]   ;;  %s1422_s1 = inlined_call_operand.hbm [shape: bf16[1024,128], index: 1, kind: input, shape index: {}]   ;;  %s1423_s2 = inlined_call_operand.vmem [shape: f32[1,128], index: 2, kind: input, shape index: {}]   ;;  %s1424_s3 = inlined_call_operand.vmem [shape: bf16[128,128], index: 3, kind: input, shape index: {}]   ;;  %s1425_s4 = inlined_call_operand.vmem [shape: f32[1,128], index: 4, kind: input, shape index: {}]   ;;  %s1426_s5 = inlined_call_operand.vmem [shape: f32[8,128], index: 5, kind: output, shape index: {}]  }
   0x1   :  { %12 = vsyncpa [#allocation4 + $0x1], 0  ;;  %s1225_s18 = smov 0   ;;  %s1227_s19 = smov 0  }
   0x2   :  { %s1229_s20 = smov 0   ;;  %s1231_s21 = smov 0  }
   0x3   :  { %s1233_s22 = smov 0   ;;  %s1235_s23 = smov 0  }
   0x4 LB: > { %s868_s24 = sadd.s32 4294967295, %s1187_s23   ;;  %s27_s25 = sadd.s32 1, %s1183_s22  ;;  %s1187_s23 = sphi %s1235_s23, %s18_s23   ;;  %s1183_s22 = sphi %s1233_s22, %s1434_s22   ;;  %s1179_s21 = sphi %s1231_s21, %s1433_s21   ;;  %s1175_s20 = sphi %s1229_s20, %s1432_s20   ;;  %s1171_s19 = sphi %s1227_s19, %s1431_s19   ;;  %s1167_s18 = sphi %s1225_s18, %s1430_s18  }
   0x5   : > { %p28_p0 = scmp.ge.s32.totalorder %s27_s25, 2  ;;  %s65_s26 = sadd.s32 1, %s1175_s20 }
   0x6   : > { %p72_p1 = scmp.ne.s32.totalorder %s1175_s20, %s1171_s19  ;;  %p73_p2 = scmp.eq.s32.totalorder %s1187_s23, 0 }
   0x7   : > { %s1436_s25 = smov (%p28_p0, %s27_s25), 0  ;;  %p78_p4 = scmp.ne.s32.totalorder %s1171_s19, %s1167_s18 }
   0x8   : > { %p1261_p3 = por %p73_p2, %p72_p1  ;;  %s62_s28 = ssub.s32 %s1183_s22, %s1436_s25 }
   0x9   : > { %p79_p5 = scmp.eq.s32.totalorder %s868_s24, 0  ;;  %p63_p6 = scmp.eq.s32.totalorder %s62_s28, 0 }
   0xa   : > { %p1009_p8 = scmp.lt.s32.totalorder %s1187_s23, 2  ;;  %s213_s6 = sand.u32 1, %s1175_s20  }
   0xb   : > { %p1268_p7 = por %p79_p5, %p78_p4  ;;  %s929_s7 = sshll.u32 %s1183_s22, 12 }
   0xc   : > { %s1274_s30 = scalar_select %p63_p6, %s1175_s20, %s65_s26  }
   0xd   : > { %s871_s8 = sshll.u32 %s213_s6, 8  ;;  %s1281_s11 = scalar_lea.hbm %s1422_s1, %s929_s7 }
   0xe   : > { %s217_s12 = scalar_lea.vmem [#allocation3], %s871_s8  ;;  %p1285_p9 = pnand %p1009_p8, %p1261_p3 }
   0xf   : > { %s224_s13 = sshll.u32 %s217_s12, 4  ;;  %s1291_s15 = scalar_lea.sflag [#allocation4], %s213_s6  ;;  %s1289_s13 = int_to_ptr.vmem [resolvable:$true] %s224_s13 }
  0x10   : > { %s1107_s16 = scalar_lea.hbm %s1281_s11, 4096  ;;  %p1109_p11 = pneg %p1285_p9 }
  0x11   : > { %p1108_p10 = scmp.ne.s32.totalorder %s1281_s11, %s1107_s16  ;;  %s1112_s24 = scalar_lea.hbm %s1422_s1, 8192 }
  0x12   : > { %p1113_p0 = scmp.lt.u32.totalorder %s1281_s11, %s1422_s1  ;;  %p1114_p1 = scmp.lt.u32.totalorder %s1112_s24, %s1107_s16 }
  0x13   : > { %p1110_p12 = pnand %p1109_p11, %p1108_p10  ;;  %p1116_p3 = scmp.lt.u32.totalorder %s1107_s16, %s1281_s11 }
  0x14   : > { %p1115_p2 = por %p1114_p1, %p1113_p0 }
  0x15   : > { %p1111_p13 = pneg %p1110_p12 }
  0x16   : > { %p1117_p4 = por %p1116_p3, %p1115_p2 }
  0x18   : > { %p1118_p5 = pnand %p1117_p4, %p1111_p13 }
  0x1a   : > { %1121 = shalt.err (!%p1118_p5)
}
  0x1b   : > { %s1122_s28 = scalar_lea.vmem %s1289_s13, 4096  ;;  %s1189_s6 = smov [#allocation3]  }
  0x1c   : > { %p1123_p6 = scmp.ne.s32.totalorder %s1289_s13, %s1122_s28  ;;  %s1127_s7 = sshll.u32 %s1189_s6, 4  ;;  %s1128_s7 = int_to_ptr.vmem [resolvable:$false] %s1127_s7 }
  0x1d   : > { %s1129_s8 = scalar_lea.vmem %s1128_s7, 8192  ;;  %p1130_p12 = scmp.lt.s32.totalorder %s1289_s13, %s1128_s7 }
  0x1e   : > { %p1125_p8 = pnand %p1123_p6, %p1109_p11  ;;  %p1131_p0 = scmp.lt.s32.totalorder %s1129_s8, %s1122_s28 }
  0x20   : > { %p1126_p10 = pneg %p1125_p8  ;;  %p1132_p1 = por %p1131_p0, %p1130_p12 }
  0x22   : > { %p1133_p2 = pnand %p1132_p1, %p1126_p10 }
  0x24   : > { %1136 = shalt.err (!%p1133_p2)
}
  0x25   : > { %s1190_s9 = smov 64   ;;  %s1191_s10 = smov 4  }
  0x26   : > { %1008 = dma.hbm_to_vmem [thread:$0]  (!%p1285_p9), %s1281_s11, 4096, %s1289_s13, %s1291_s15, %s1190_s9, %s1190_s9, %s1191_s10  }
  0x27   : > { %p874_p11 = scmp.ge.s32.totalorder %s1187_s23, 1  ;;  %p232_p13 = scmp.lt.s32.totalorder %s1187_s23, 3 }
  0x29   : > { %p233_p3 = pnand %p874_p11, %p232_p13 }
  0x2a   : > { %s238_s12 = sand.u32 (!%p233_p3), 1, %s1171_s19  }
  0x2b   : > { %236 = sbr.rel (%p233_p3) target bundleno = 543 (0x21f), region = 40  ;;  %s875_s16 = sshll.u32 (!%p233_p3), %s238_s12, 8 }
  0x2c   : > { %s239_s17 = scalar_lea.sflag (!%p233_p3), [#allocation4], %s238_s12  ;;  %s1322_s18 = scalar_lea.vmem (!%p233_p3), [#allocation3], %s875_s16 }
  0x32   : > { %1162 = dma.done.wait (%p1268_p7), %s239_s17, 4096  }
  0x33   : > { %1164 = vsyncadd (%p1268_p7), %s239_s17, 4294963200  ;;  %s876_s24 = sshll.u32 %s1179_s21, 2  ;;  %p878_p9 = scmp.ne.s32.totalorder %s1179_s21, 0 }
  0x34   : > { %p280_p4 = scmp.lt.s32.totalorder %s876_s24, 7  ;;  %v1192_v0 = vmov (!%p878_p9), 0.0  }
  0x35   : > { %296 = sbr.rel (%p878_p9) target bundleno = 60 (0x3c), region = 48  ;;  %297 = vst [vmem:[#allocation2] sm:$0xff] (!%p878_p9), %v1192_v0 }
  0x36   : > { %s1438_s24 = smov (!%p280_p4, %s876_s24), 7 }
  0x37   : > { %s877_s11 = sshll.u32 %s1438_s24, 2 }
  0x38   : > { %s1332_s15 = scalar_lea.vmem %s1421_s0, %s877_s11 }
  0x3c PF: > { %v1063_v1 = vld [vmem:[%s1322_s18 + $0x40] sm:$0xff]   ;;  %v1067_v5 = vld [vmem:[%s1322_s18 + $0x48] sm:$0xff]   ;;  %v1071_v9 = vld [vmem:[%s1322_s18 + $0x50] sm:$0xff]   ;;  %p915_p7 = scmp.ne.s32.totalorder %s1179_s21, 1 }
  0x3d   : > { %v1064_v2 = vld [vmem:[%s1322_s18 + $0xc0] sm:$0xff]   ;;  %930 = vmatprep.subr.bf16.mxu0 %v1063_v1  ;;  %v1068_v6 = vld [vmem:[%s1322_s18 + $0xc8] sm:$0xff]   ;;  %v1072_v10 = vld [vmem:[%s1322_s18 + $0xd0] sm:$0xff]   ;;  %v1193_v53 = vmov (!%p915_p7), 0.0   ;;  %vm1194_vm0 = vmmov (!%p915_p7), 0  }
  0x3e   : > { %v1065_v3 = vld [vmem:[%s1322_s18] sm:$0xff]   ;;  %952 = vmatprep.subr.bf16.mxu1 %v1064_v2  ;;  %v1069_v7 = vld [vmem:[%s1322_s18 + $0x8] sm:$0xff]   ;;  %v1073_v11 = vld [vmem:[%s1322_s18 + $0x10] sm:$0xff]  }
  0x3f   : > { %v1066_v4 = vld [vmem:[%s1322_s18 + $0x80] sm:$0xff]   ;;  %931 = vmatpush3.bf16.msra.mxu0 %v1065_v3  ;;  %v1070_v8 = vld [vmem:[%s1322_s18 + $0x88] sm:$0xff]   ;;  %v1074_v12 = vld [vmem:[%s1322_s18 + $0x90] sm:$0xff]  }
  0x40   : > { %953 = vmatpush3.bf16.msra.mxu1 %v1066_v4  ;;  %932 = vmatprep.subr.bf16.mxu0 %v1067_v5  ;;  %v1075_v13 = vld [vmem:[%s1322_s18 + $0x58] sm:$0xff]   ;;  %v1079_v17 = vld [vmem:[%s1322_s18 + $0x60] sm:$0xff]   ;;  %v1083_v21 = vld [vmem:[%s1322_s18 + $0x68] sm:$0xff]  }
  0x41   : > { %954 = vmatprep.subr.bf16.mxu1 %v1068_v6  ;;  %v1076_v14 = vld [vmem:[%s1322_s18 + $0xd8] sm:$0xff]   ;;  %v1080_v18 = vld [vmem:[%s1322_s18 + $0xe0] sm:$0xff]   ;;  %v1084_v22 = vld [vmem:[%s1322_s18 + $0xe8] sm:$0xff]  }
  0x42   : > { %v1077_v15 = vld [vmem:[%s1322_s18 + $0x18] sm:$0xff]   ;;  %v1081_v19 = vld [vmem:[%s1322_s18 + $0x20] sm:$0xff]   ;;  %v1085_v23 = vld [vmem:[%s1322_s18 + $0x28] sm:$0xff]  }
  0x43   : > { %933 = vmatpush3.bf16.msra.mxu0 %v1069_v7  ;;  %v1078_v16 = vld [vmem:[%s1322_s18 + $0x98] sm:$0xff]   ;;  %v1082_v20 = vld [vmem:[%s1322_s18 + $0xa0] sm:$0xff]   ;;  %v1086_v24 = vld [vmem:[%s1322_s18 + $0xa8] sm:$0xff]  }
  0x44   : > { %955 = vmatpush3.bf16.msra.mxu1 %v1070_v8  ;;  %934 = vmatprep.subr.bf16.mxu0 %v1071_v9  ;;  %v1087_v25 = vld [vmem:[%s1322_s18 + $0x70] sm:$0xff]   ;;  %v1091_v29 = vld [vmem:[%s1322_s18 + $0x78] sm:$0xff]   ;;  %v300_v34 = vld [vmem:[%s1332_s15 + $0x8] sm:$0xff] }
  0x45   : > { %956 = vmatprep.subr.bf16.mxu1 %v1072_v10  ;;  %v1088_v26 = vld [vmem:[%s1322_s18 + $0xf0] sm:$0xff]   ;;  %v1092_v30 = vld [vmem:[%s1322_s18 + $0xf8] sm:$0xff]   ;;  %v881_v37 = vcombine.low %v300_v34, %v300_v34  ;;  %v882_v38 = vcombine.high %v300_v34, %v300_v34  ;;  %v1100_v54 = vld [vmem:[%s1424_s3 + $0x8] sm:$0xff] (!%p915_p7)  }
  0x46   : > { %v1089_v27 = vld [vmem:[%s1322_s18 + $0x30] sm:$0xff]   ;;  %v1093_v31 = vld [vmem:[%s1322_s18 + $0x38] sm:$0xff]   ;;  %v1101_v55 = vld [vmem:[%s1424_s3 + $0x10] sm:$0xff] (!%p915_p7)  }
  0x47   : > { %935 = vmatpush3.bf16.msra.mxu0 %v1073_v11  ;;  %v1090_v28 = vld [vmem:[%s1322_s18 + $0xb0] sm:$0xff]   ;;  %v1094_v32 = vld [vmem:[%s1322_s18 + $0xb8] sm:$0xff]   ;;  %643 = vmatprep.mubr.bf16.mxu1 %v882_v38  ;;  %v1104_v58 = vld [vmem:[%s1424_s3 + $0x28] sm:$0xff] (!%p915_p7)  }
  0x48   : > { %957 = vmatpush3.bf16.msra.mxu1 %v1074_v12  ;;  %936 = vmatprep.subr.bf16.mxu0 %v1075_v13  ;;  %v299_v33 = vld [vmem:[%s1332_s15] sm:$0xff]  ;;  %v1102_v56 = vld [vmem:[%s1424_s3 + $0x18] sm:$0xff] (!%p915_p7)   ;;  %v1105_v62 = vld [vmem:[%s1424_s3 + $0x30] sm:$0xff] (!%p915_p7)  }
  0x49   : > { %958 = vmatprep.subr.bf16.mxu1 %v1076_v14  ;;  %v879_v35 = vcombine.low %v299_v33, %v299_v33  ;;  %v880_v36 = vcombine.high %v299_v33, %v299_v33  ;;  %v298_v47 = vld [vmem:[#allocation2] sm:$0xff]  ;;  %v1106_v0 = vld [vmem:[%s1424_s3 + $0x38] sm:$0xff] (!%p915_p7)  }
  0x4a   : > { %v1099_v52 = vld [vmem:[%s1424_s3] sm:$0xff] (!%p915_p7)  }
  0x4b   : > { %937 = vmatpush3.bf16.msra.mxu0 %v1077_v15  ;;  %603 = vmatprep.mubr.bf16.mxu0 %v880_v36  ;;  %v1103_v57 = vld [vmem:[%s1424_s3 + $0x20] sm:$0xff] (!%p915_p7)  }
  0x4c   : > { %959 = vmatpush3.bf16.msra.mxu1 %v1078_v16  ;;  %938 = vmatprep.subr.bf16.mxu0 %v1079_v17  ;;  %v916_v60 = vld [vmem:[%s1423_s2] ss:$0 sm:$0xff] (!%p915_p7) }
  0x4d   : > { %960 = vmatprep.subr.bf16.mxu1 %v1080_v18  ;;  %v917_v2 = vld [vmem:[%s1425_s4] ss:$0 sm:$0xff] (!%p915_p7) }
  0x4f   : > { %939 = vmatpush3.bf16.msra.mxu0 %v1081_v19 }
  0x50   : > { %961 = vmatpush3.bf16.msra.mxu1 %v1082_v20  ;;  %940 = vmatprep.subr.bf16.mxu0 %v1083_v21 }
  0x51   : > { %962 = vmatprep.subr.bf16.mxu1 %v1084_v22 }
  0x53   : > { %941 = vmatpush3.bf16.msra.mxu0 %v1085_v23 }
  0x54   : > { %963 = vmatpush3.bf16.msra.mxu1 %v1086_v24  ;;  %942 = vmatprep.subr.bf16.mxu0 %v1087_v25 }
  0x55   : > { %964 = vmatprep.subr.bf16.mxu1 %v1088_v26 }
  0x57   : > { %943 = vmatpush3.bf16.msra.mxu0 %v1089_v27 }
  0x58   : > { %965 = vmatpush3.bf16.msra.mxu1 %v1090_v28  ;;  %944 = vmatprep.subr.bf16.mxu0 %v1091_v29 }
  0x59   : > { %966 = vmatprep.subr.bf16.mxu1 %v1092_v30 }
  0x5b   : > { %945 = vmatpush3.bf16.msra.mxu0 %v1093_v31 }
  0x5c   : > { %967 = vmatpush3.bf16.msra.mxu1 %v1094_v32  ;;  %983 = vmatprep.subr.bf16.mxu0 (!%p915_p7), %v1193_v53 }
  0x5e   : > { %604 = vmatmul.mubr.bf16.vlgmr.msra.gmra.mrb[0].mxu0 %v879_v35 }
  0x5f   : > { %644 = vmatmul.mubr.bf16.vlgmr.msra.gmra.mrb[0].mxu1 %v881_v37  ;;  %984 = vmatpush3.bf16.msra.mxu0 (!%p915_p7), %v1099_v52 }
  0x60   : > { %999 = vmatprep.mubr.msk.bf16.mxu0 (!%p915_p7), %vm1194_vm0, %v1193_v53  ;;  %985 = vmatprep.subr.bf16.mxu0 (!%p915_p7), %v1193_v53 }
  0x63   : > { %986 = vmatpush3.bf16.msra.mxu0 (!%p915_p7), %v1100_v54 }
  0x64   : > { %987 = vmatprep.subr.bf16.mxu0 (!%p915_p7), %v1193_v53 }
  0x67   : > { %988 = vmatpush3.bf16.msra.mxu0 (!%p915_p7), %v1101_v55 }
  0x68   : > { %989 = vmatprep.subr.bf16.mxu0 (!%p915_p7), %v1193_v53 }
  0x6b   : > { %990 = vmatpush3.bf16.msra.mxu0 (!%p915_p7), %v1102_v56 }
  0x6c   : > { %991 = vmatprep.subr.bf16.mxu0 (!%p915_p7), %v1193_v53 }
  0x6f   : > { %992 = vmatpush3.bf16.msra.mxu0 (!%p915_p7), %v1103_v57 }
  0x70   : > { %993 = vmatprep.subr.bf16.mxu0 (!%p915_p7), %v1193_v53 }
  0x73   : > { %994 = vmatpush3.bf16.msra.mxu0 (!%p915_p7), %v1104_v58 }
  0x74   : > { %995 = vmatprep.subr.bf16.mxu0 (!%p915_p7), %v1193_v53 }
  0x77   : > { %996 = vmatpush3.bf16.msra.mxu0 (!%p915_p7), %v1105_v62 }
  0x78   : > { %997 = vmatprep.subr.bf16.mxu0 (!%p915_p7), %v1193_v53 }
  0x7b   : > { %998 = vmatpush3.bf16.msra.mxu0 (!%p915_p7), %v1106_v0 }
 0x131   : > { %v946_v39 = vpop.f32.mrb[0].mxu0 }
 0x132   : > { %v968_v40 = vpop.f32.mrb[0].mxu1  ;;  %v947_v41 = vpop.f32.mrb[1].mxu0 }
 0x133   : > { %v969_v42 = vpop.f32.mrb[1].mxu1  ;;  %v948_v43 = vadd.f32 %v947_v41, %v946_v39  ;;  %v949_v45 = vpop.f32.mrb[2].mxu0 }
 0x134   : > { %v970_v44 = vadd.f32 %v969_v42, %v968_v40  ;;  %v971_v46 = vpop.f32.mrb[2].mxu1  ;;  %v950_v48 = vpop.f32.mrb[3].mxu0  ;;  %656 = sbr.rel (%p915_p7) target bundleno = 543 (0x21f), region = 52 }
 0x135   : > { %v972_v49 = vpop.f32.mrb[3].mxu1 }
 0x136   : > { %v646_v50 = vadd.f32 %v970_v44, %v948_v43 }
 0x138   : > { %v651_v51 = vadd.f32 %v646_v50, %v298_v47 }
 0x13a   : > { %652 = vst [vmem:[#allocation2] sm:$0xff] %v651_v51 }
 0x141   : > { %v657_v59 = vld [vmem:[#allocation2] sm:$0xff] }
 0x142   : > { %v665_v61 = vadd.f32 %v916_v60, %v657_v59 }
 0x144   : > { %v666_v63 = vmax.f32 %v665_v61, 0.0 }
 0x146   : > { %v667_v1 = vpack.c.bf16 %v666_v63, %v666_v63 }
 0x148   : > { %1000 = vmatmul.mubr.bf16.vlgmr.msra.gmra.mrb[0].mxu0 %v667_v1 }
 0x21b   : > { %v773_v3 = vpop.f32.mrb[0].mxu0 }
 0x21c   : > { %v774_v4 = vadd.f32 %v917_v2, %v773_v3  ;;  %v1001_v5 = vpop.f32.mrb[1].mxu0 }
 0x21d   : > { %v776_v6 = vpop.f32.mrb[2].mxu0 }
 0x21e   : > { %779 = vst [vmem:[%s1426_s5] sm:$0xff] %v774_v4  ;;  %v1002_v7 = vpop.f32.mrb[3].mxu0 }
 0x21f PF: > { %s18_s23 = sadd.s32 1, %s1187_s23   ;;  %s1430_s18 = smov %s1171_s19 }
 0x220   : > { %p15_p5 = scmp.ge.s32.totalorder %s18_s23, 4   ;;  %s1431_s19 = smov %s1175_s20 }
 0x221   : > { %s1432_s20 = smov %s1274_s30  ;;  %s1433_s21 = smov %s1183_s22 }
 0x222   : > { %s1434_s22 = smov %s1436_s25  ;;  %17 = sbr.rel (!%p15_p5) target bundleno = 4 (0x4), region = 91 }
 0x229   :  { %799 = vsyncpa [#allocation4], 1 }
 0x22a   :  { %801 = vsyncpa [#allocation4 + $0x1], 1 }

</bundles_post_ra>
